<compile_context>
chip_gen: v7x
topology: tpu7x:2x2x1
jax: 0.10.0
libtpu: 0.0.40
codegen_flags: <defaults>
</compile_context>

<pallas_src>
import functools

import jax
import jax.numpy as jnp
from jax.experimental import pallas as pl
from jax.experimental.pallas import tpu as pltpu


# ----------------------------------------------------------------------------
# Kernel
# ----------------------------------------------------------------------------
def baseline_nn_kernel(q1_ref, q2_ref, w1a_ref, w1b_ref, b1_ref,
                       w2_ref, b2_ref, o_ref):
    # Sum-pool over the sequence axis in f32 (1/S is folded into w1a/w1b).
    q1s = jnp.sum(q1_ref[...].astype(jnp.float32), axis=1)   # (TB, D)
    q2s = jnp.sum(q2_ref[...].astype(jnp.float32), axis=1)   # (TB, D)

    # fc1: cat([q1_mean, q2_mean], -1) @ W1 + b1 == q1s @ W1a + q2s @ W1b + b1
    h = (jnp.dot(q1s, w1a_ref[...], preferred_element_type=jnp.float32)
         + jnp.dot(q2s, w1b_ref[...], preferred_element_type=jnp.float32)
         + b1_ref[...])                                       # (TB, H)
    h = jnp.maximum(h, 0.0)                                   # ReLU

    # fc2: h @ W2 + b2   (N=2 is tiny; its cost is noise vs. the q1/q2 reads)
    out = jnp.dot(h, w2_ref[...], preferred_element_type=jnp.float32) + b2_ref[...]
    o_ref[...] = out.astype(o_ref.dtype)


# ----------------------------------------------------------------------------
# Sizing helpers (generation-aware, padded-layout VMEM accounting)
# ----------------------------------------------------------------------------
def _round_up(x, m):
    return ((x + m - 1) // m) * m


def _padded_q_block_bytes(tb, S, D, dtype):
    """Bytes of one (tb, S, D) input block as actually laid out in VMEM."""
    itemsize = jnp.dtype(dtype).itemsize
    lanes = _round_up(D, 128)                       # 300 -> 384
    sub_mult = 8 * max(1, 4 // itemsize)            # 8 (f32) / 16 (bf16)
    sublanes = _round_up(S, sub_mult)               # 8 -> 8 (f32) / 16 (bf16)
    return tb * sublanes * lanes * itemsize


def _padded_weight_bytes(D, H, O):
    """Padded f32 bytes of w1a + w1b + b1 + w2 + b2 (resident blocks)."""
    def blk(r, c):
        return _round_up(r, 8) * _round_up(c, 128) * 4
    return blk(D, H) * 2 + blk(1, H) + blk(H, O) + blk(1, O)


def _tpu_generation():
    """Returns (default_tb, vmem_cap_bytes, input_buffers)."""
    vmem_cap = 128 << 20
    try:
        info = pltpu.get_tpu_info()
        vmem_cap = int(getattr(info, "vmem_capacity_bytes", vmem_cap))
    except Exception:
        pass
    if vmem_cap <= (64 << 20) + (1 << 20):
        # v7x-like: 64 MiB per-TC VMEM, very fast HBM. Smaller tile, deeper
        # input pipeline, and a scoped-VMEM cap well under the physical limit.
        return 512, 48 << 20, 3
    # v5e/v6e-like: 128 MiB VMEM. Big tile to amortize per-step overhead.
    return 1024, 100 << 20, 2


def _auto_config(B, S, D, H, O, dtype, requested_tb):
    tb_default, vmem_cap, bufs = _tpu_generation()

    tb = tb_default if requested_tb is None else int(requested_tb)
    if B <= tb:
        tb = B                                  # full-extent block: always legal
    else:
        tb = max(8, (tb // 8) * 8)              # batch tile feeds the out block's
                                                # second-to-last dim -> multiple of 8

    def vmem_needed(tile):
        in_bytes = _padded_q_block_bytes(tile, S, D, dtype)
        out_bytes = tile * _round_up(O, 128) * 4
        # 2 inputs x `bufs` pipeline buffers + resident (double-buffered) weights
        # + double-buffered output + headroom.
        return (2 * bufs * in_bytes + 2 * _padded_weight_bytes(D, H, O)
                + 2 * out_bytes + (2 << 20))

    # Shrink the tile until the padded VMEM budget fits this generation's cap.
    if requested_tb is None:
        while tb > 8 and tb < B and vmem_needed(tb) > vmem_cap:
            tb = max(8, ((tb // 2) // 8) * 8)
        if B <= tb:
            tb = B

    vmem_limit = int(min(max(vmem_needed(tb), 32 << 20), vmem_cap))
    return tb, bufs, vmem_limit


def _q_block_spec(tb, S, D, bufs):
    index_map = lambda i: (i, 0, 0)
    if bufs != 2:
        try:
            return pl.BlockSpec((tb, S, D), index_map,
                                pipeline_mode=pl.Buffered(bufs))
        except Exception:
            pass  # older jax: fall back to default double-buffering
    return pl.BlockSpec((tb, S, D), index_map)


# ----------------------------------------------------------------------------
# Forward wrapper
# ----------------------------------------------------------------------------
@functools.partial(jax.jit, static_argnames=("batch_tile", "bufs", "vmem_limit"))
def _forward_impl(q1, q2, w1, b1, w2, b2, *, batch_tile, bufs, vmem_limit):
    B, S, D = q1.shape
    H = w1.shape[1]
    O = w2.shape[1]
    tb = batch_tile

    # Fold the 1/S mean scaling into the (tiny) W1 halves at trace time.
    inv_s = jnp.float32(1.0 / S)
    w1f = w1.astype(jnp.float32)
    w1a = w1f[:D, :] * inv_s          # multiplies sum(q1, axis=1)
    w1b = w1f[D:, :] * inv_s          # multiplies sum(q2, axis=1)
    b1_2d = b1.astype(jnp.float32).reshape(1, H)
    w2f = w2.astype(jnp.float32)
    b2_2d = b2.astype(jnp.float32).reshape(1, O)

    grid = (pl.cdiv(B, tb),)
    itemsize = jnp.dtype(q1.dtype).itemsize

    cost = pl.CostEstimate(
        flops=int(2 * B * S * D + 2 * B * (2 * D * H + H * O)),
        transcendentals=0,
        bytes_accessed=int(2 * B * S * D * itemsize
                           + (2 * D * H + H + H * O + O) * 4
                           + B * O * 4),
    )

    q_spec = _q_block_spec(tb, S, D, bufs)
    # Constant index_maps keep weights/biases pinned in VMEM across grid steps.
    const2d = lambda i: (0, 0)

    return pl.pallas_call(
        baseline_nn_kernel,
        out_shape=jax.ShapeDtypeStruct((B, O), jnp.float32),
        grid=grid,
        in_specs=[
            q_spec,                                  # q1 (streamed)
            q_spec,                                  # q2 (streamed)
            pl.BlockSpec((D, H), const2d),           # w1a (resident)
            pl.BlockSpec((D, H), const2d),           # w1b (resident)
            pl.BlockSpec((1, H), const2d),           # b1  (resident)
            pl.BlockSpec((H, O), const2d),           # w2  (resident)
            pl.BlockSpec((1, O), const2d),           # b2  (resident)
        ],
        out_specs=pl.BlockSpec((tb, O), lambda i: (i, 0)),
        compiler_params=pltpu.CompilerParams(
            dimension_semantics=("parallel",),
            vmem_limit_bytes=vmem_limit,
        ),
        cost_estimate=cost,
    )(q1, q2, w1a, w1b, b1_2d, w2f, b2_2d)


def baseline_nn_forward(q1, q2, w1, b1, w2, b2, *, batch_tile=None):
    """q1, q2: (B, S, D) [f32 or bf16 -- bf16 halves HBM traffic, accumulation
    stays f32 in-kernel]. w1: (2D, H) [in, out]. w2: (H, O) [in, out]."""
    B, S, D = q1.shape
    H = w1.shape[1]
    O = w2.shape[1]
    tb, bufs, vmem_limit = _auto_config(B, S, D, H, O, q1.dtype, batch_tile)
    return _forward_impl(q1, q2, w1, b1, w2, b2,
                         batch_tile=tb, bufs=bufs, vmem_limit=vmem_limit)


# ----------------------------------------------------------------------------
# Params / reference / test
# ----------------------------------------------------------------------------
def init_params(key, embedding_dim=300, hidden=128, out_dim=2):
    """Deterministic init matching the torch layer shapes (stored as (in, out))."""
    k1, k2, k3, k4 = jax.random.split(key, 4)
    in1 = embedding_dim * 2
    bound1 = 1.0 / jnp.sqrt(in1)
    bound2 = 1.0 / jnp.sqrt(hidden)
    w1 = jax.random.uniform(k1, (in1, hidden), jnp.float32, -bound1, bound1)
    b1 = jax.random.uniform(k2, (hidden,), jnp.float32, -bound1, bound1)
    w2 = jax.random.uniform(k3, (hidden, out_dim), jnp.float32, -bound2, bound2)
    b2 = jax.random.uniform(k4, (out_dim,), jnp.float32, -bound2, bound2)
    return w1, b1, w2, b2


def _reference(q1, q2, w1, b1, w2, b2):
    combined = jnp.concatenate(
        [q1.astype(jnp.float32).mean(axis=1), q2.astype(jnp.float32).mean(axis=1)],
        axis=1)
    return jnp.maximum(combined @ w1 + b1, 0.0) @ w2 + b2


if __name__ == "__main__":
    key = jax.random.PRNGKey(0)
    k_q1, k_q2, k_params, k_big = jax.random.split(key, 4)

    batch, seq, embedding_dim = 2, 8, 300
    q1 = jax.random.normal(k_q1, (batch, seq, embedding_dim), jnp.float32)
    q2 = jax.random.normal(k_q2, (batch, seq, embedding_dim), jnp.float32)
    w1, b1, w2, b2 = init_params(k_params, embedding_dim)

    # --- f32 path, single batch tile (grid of 1) ---
    out = baseline_nn_forward(q1, q2, w1, b1, w2, b2)
    out = jax.block_until_ready(out)
    ref = _reference(q1, q2, w1, b1, w2, b2)
    assert out.shape == (batch, 2)
    assert jnp.allclose(out, ref, atol=1e-4, rtol=1e-4)

    # --- bf16 input streaming (halves HBM traffic), f32 accumulation inside ---
    out_bf16 = baseline_nn_forward(q1.astype(jnp.bfloat16), q2.astype(jnp.bfloat16),
                                   w1, b1, w2, b2)
    out_bf16 = jax.block_until_ready(out_bf16)
    assert jnp.allclose(out_bf16, ref, atol=5e-2, rtol=5e-2)

    # --- multi-tile grid (exercise pipelined path + ragged last block) ---
    kb1, kb2 = jax.random.split(k_big)
    Bb = 20
    q1b = jax.random.normal(kb1, (Bb, seq, embedding_dim), jnp.float32)
    q2b = jax.random.normal(kb2, (Bb, seq, embedding_dim), jnp.float32)
    out_b = baseline_nn_forward(q1b, q2b, w1, b1, w2, b2, batch_tile=8)
    out_b = jax.block_until_ready(out_b)
    ref_b = _reference(q1b, q2b, w1, b1, w2, b2)
    assert out_b.shape == (Bb, 2)
    assert jnp.allclose(out_b, ref_b, atol=1e-4, rtol=1e-4)

    # --- auto (generation-aware) tiling path on a bigger batch ---
    Bc = 96
    q1c = jnp.tile(q1b, (Bc // Bb + 1, 1, 1))[:Bc]
    q2c = jnp.tile(q2b, (Bc // Bb + 1, 1, 1))[:Bc]
    out_c = jax.block_until_ready(baseline_nn_forward(q1c, q2c, w1, b1, w2, b2))
    ref_c = _reference(q1c, q2c, w1, b1, w2, b2)
    assert jnp.allclose(out_c, ref_c, atol=1e-4, rtol=1e-4)

    print("KERNEL_OK")
</pallas_src>

<mosaic_0001>
module attributes {stable_mosaic.version = 11 : i64} {
  func.func @baseline_nn_kernel(%arg0: i32, %arg1: memref<2x8x300xf32, #tpu.memory_space<vmem>>, %arg2: memref<2x8x300xf32, #tpu.memory_space<vmem>>, %arg3: memref<300x128xf32, #tpu.memory_space<vmem>>, %arg4: memref<300x128xf32, #tpu.memory_space<vmem>>, %arg5: memref<1x128xf32, #tpu.memory_space<vmem>>, %arg6: memref<128x2xf32, #tpu.memory_space<vmem>>, %arg7: memref<1x2xf32, #tpu.memory_space<vmem>>, %arg8: memref<2x2xf32, #tpu.memory_space<vmem>>) attributes {dimension_semantics = [#tpu.dimension_semantics<parallel>], iteration_bounds = array<i64: 1>, scalar_prefetch = 0 : i64, scratch_operands = 0 : i64, tpu.core_type = #tpu.core_type<tc>, window_params = [{transform_indices = @transform_0, window_bounds = array<i64: 2, 8, 300>}, {transform_indices = @transform_1, window_bounds = array<i64: 2, 8, 300>}, {pipeline_mode = #tpu.pipeline_mode<synchronous>, transform_indices = @transform_2, window_bounds = array<i64: 300, 128>}, {pipeline_mode = #tpu.pipeline_mode<synchronous>, transform_indices = @transform_3, window_bounds = array<i64: 300, 128>}, {pipeline_mode = #tpu.pipeline_mode<synchronous>, transform_indices = @transform_4, window_bounds = array<i64: 1, 128>}, {pipeline_mode = #tpu.pipeline_mode<synchronous>, transform_indices = @transform_5, window_bounds = array<i64: 128, 2>}, {pipeline_mode = #tpu.pipeline_mode<synchronous>, transform_indices = @transform_6, window_bounds = array<i64: 1, 2>}, {transform_indices = @transform_7, window_bounds = array<i64: 2, 2>}]} {
    %c0 = arith.constant 0 : index
    %c0_0 = arith.constant 0 : index
    %c0_1 = arith.constant 0 : index
    %0 = vector.load %arg1[%c0, %c0_0, %c0_1] : memref<2x8x300xf32, #tpu.memory_space<vmem>>, vector<2x8x300xf32>
    %cst = arith.constant dense<0.000000e+00> : vector<2x300xf32>
    %1 = vector.multi_reduction <add>, %0, %cst [1] : vector<2x8x300xf32> to vector<2x300xf32>
    %c0_2 = arith.constant 0 : index
    %c0_3 = arith.constant 0 : index
    %c0_4 = arith.constant 0 : index
    %2 = vector.load %arg2[%c0_2, %c0_3, %c0_4] : memref<2x8x300xf32, #tpu.memory_space<vmem>>, vector<2x8x300xf32>
    %cst_5 = arith.constant dense<0.000000e+00> : vector<2x300xf32>
    %3 = vector.multi_reduction <add>, %2, %cst_5 [1] : vector<2x8x300xf32> to vector<2x300xf32>
    %c0_6 = arith.constant 0 : index
    %c0_7 = arith.constant 0 : index
    %4 = vector.load %arg3[%c0_6, %c0_7] : memref<300x128xf32, #tpu.memory_space<vmem>>, vector<300x128xf32>
    %cst_8 = arith.constant dense<0.000000e+00> : vector<2x128xf32>
    %5 = tpu.matmul %1, %4, %cst_8 {dimension_numbers = #tpu.dot_dimension_numbers<[1], [0], [0], [1], [0, 0, 1, 1], [], []>} : vector<2x300xf32>, vector<300x128xf32>, vector<2x128xf32> -> vector<2x128xf32>
    %c0_9 = arith.constant 0 : index
    %c0_10 = arith.constant 0 : index
    %6 = vector.load %arg4[%c0_9, %c0_10] : memref<300x128xf32, #tpu.memory_space<vmem>>, vector<300x128xf32>
    %cst_11 = arith.constant dense<0.000000e+00> : vector<2x128xf32>
    %7 = tpu.matmul %3, %6, %cst_11 {dimension_numbers = #tpu.dot_dimension_numbers<[1], [0], [0], [1], [0, 0, 1, 1], [], []>} : vector<2x300xf32>, vector<300x128xf32>, vector<2x128xf32> -> vector<2x128xf32>
    %8 = arith.addf %5, %7 : vector<2x128xf32>
    %c0_12 = arith.constant 0 : index
    %c0_13 = arith.constant 0 : index
    %9 = vector.load %arg5[%c0_12, %c0_13] : memref<1x128xf32, #tpu.memory_space<vmem>>, vector<1x128xf32>
    %10 = vector.broadcast %9 : vector<1x128xf32> to vector<2x128xf32>
    %11 = arith.addf %8, %10 : vector<2x128xf32>
    %cst_14 = arith.constant 0.000000e+00 : f32
    %12 = vector.broadcast %cst_14 : f32 to vector<2x128xf32>
    %13 = arith.maximumf %11, %12 : vector<2x128xf32>
    %c0_15 = arith.constant 0 : index
    %c0_16 = arith.constant 0 : index
    %14 = vector.load %arg6[%c0_15, %c0_16] : memref<128x2xf32, #tpu.memory_space<vmem>>, vector<128x2xf32>
    %cst_17 = arith.constant dense<0.000000e+00> : vector<2x2xf32>
    %15 = tpu.matmul %13, %14, %cst_17 {dimension_numbers = #tpu.dot_dimension_numbers<[1], [0], [0], [1], [0, 0, 1, 1], [], []>} : vector<2x128xf32>, vector<128x2xf32>, vector<2x2xf32> -> vector<2x2xf32>
    %c0_18 = arith.constant 0 : index
    %c0_19 = arith.constant 0 : index
    %16 = vector.load %arg7[%c0_18, %c0_19] : memref<1x2xf32, #tpu.memory_space<vmem>>, vector<1x2xf32>
    %17 = vector.broadcast %16 : vector<1x2xf32> to vector<2x2xf32>
    %18 = arith.addf %15, %17 : vector<2x2xf32>
    %c0_20 = arith.constant 0 : index
    %c0_21 = arith.constant 0 : index
    %19 = vector.load %arg8[%c0_20, %c0_21] : memref<2x2xf32, #tpu.memory_space<vmem>>, vector<2x2xf32>
    tpu.vector_store %arg8[%c0_20, %c0_21], %18 {strides = array<i32>} : memref<2x2xf32, #tpu.memory_space<vmem>>, vector<2x2xf32>,
    return
  }
  func.func @transform_0(%arg0: i32) -> (i32, i32, i32) {
    %c0_i32 = arith.constant 0 : i32
    %c0_i32_0 = arith.constant 0 : i32
    %c0_i32_1 = arith.constant 0 : i32
    return %arg0, %c0_i32, %c0_i32_0 : i32, i32, i32
  }
  func.func @transform_1(%arg0: i32) -> (i32, i32, i32) {
    %c0_i32 = arith.constant 0 : i32
    %c0_i32_0 = arith.constant 0 : i32
    %c0_i32_1 = arith.constant 0 : i32
    return %arg0, %c0_i32, %c0_i32_0 : i32, i32, i32
  }
  func.func @transform_2(%arg0: i32) -> (i32, i32) {
    %c0_i32 = arith.constant 0 : i32
    %c0_i32_0 = arith.constant 0 : i32
    %c0_i32_1 = arith.constant 0 : i32
    return %c0_i32, %c0_i32_0 : i32, i32
  }
  func.func @transform_3(%arg0: i32) -> (i32, i32) {
    %c0_i32 = arith.constant 0 : i32
    %c0_i32_0 = arith.constant 0 : i32
    %c0_i32_1 = arith.constant 0 : i32
    return %c0_i32, %c0_i32_0 : i32, i32
  }
  func.func @transform_4(%arg0: i32) -> (i32, i32) {
    %c0_i32 = arith.constant 0 : i32
    %c0_i32_0 = arith.constant 0 : i32
    %c0_i32_1 = arith.constant 0 : i32
    return %c0_i32, %c0_i32_0 : i32, i32
  }
  func.func @transform_5(%arg0: i32) -> (i32, i32) {
    %c0_i32 = arith.constant 0 : i32
    %c0_i32_0 = arith.constant 0 : i32
    %c0_i32_1 = arith.constant 0 : i32
    return %c0_i32, %c0_i32_0 : i32, i32
  }
  func.func @transform_6(%arg0: i32) -> (i32, i32) {
    %c0_i32 = arith.constant 0 : i32
    %c0_i32_0 = arith.constant 0 : i32
    %c0_i32_1 = arith.constant 0 : i32
    return %c0_i32, %c0_i32_0 : i32, i32
  }
  func.func @transform_7(%arg0: i32) -> (i32, i32) {
    %c0_i32 = arith.constant 0 : i32
    %c0_i32_0 = arith.constant 0 : i32
    return %arg0, %c0_i32 : i32, i32
  }
}

</mosaic_0001>

<bundles_post_ra>
// kernel: _forward_impl.1
= control target key start
LH: loop header
LB: loop body
LE: loop exit
PB: predicated region body
PF: predicated region fallthrough
CT: control target
= control target key end

     0   :  { %v933_v3 = vmov 0.0|0.0   ;;  %vm934_vm0 = vmmov 0   ;;  %v935_v13 = vmov 0.0   ;;  %vm45_vm1 = vcmask 359424   ;;  %s1370_s0 = inlined_call_operand.vmem [shape: f32[2,8,300], index: 0, kind: input, shape index: {}]   ;;  %s1371_s1 = inlined_call_operand.vmem [shape: f32[2,8,300], index: 1, kind: input, shape index: {}]   ;;  %s1372_s2 = inlined_call_operand.vmem [shape: f32[300,128], index: 2, kind: input, shape index: {}]   ;;  %s1373_s3 = inlined_call_operand.vmem [shape: f32[300,128], index: 3, kind: input, shape index: {}]   ;;  %s1374_s4 = inlined_call_operand.vmem [shape: f32[1,128], index: 4, kind: input, shape index: {}]   ;;  %s1375_s5 = inlined_call_operand.vmem [shape: f32[128,2], index: 5, kind: input, shape index: {}]   ;;  %s1376_s6 = inlined_call_operand.vmem [shape: f32[1,2], index: 6, kind: input, shape index: {}]   ;;  %s1377_s7 = inlined_call_operand.hbm [shape: f32[2,2], index: 7, kind: output, shape index: {}]  }
   0x1   :  { %v170_v0 = vld [vmem:[%s1373_s3 + $0x80] sm:$0xff]  ;;  %v171_v1 = vld [vmem:[%s1373_s3 + $0x88] sm:$0xff]  ;;  %828 = vmatprep.subr.bf16.mxu1 %v933_v3  ;;  %v172_v10 = vld [vmem:[%s1373_s3 + $0x90] sm:$0xff]  ;;  %743 = vmatprep.mubr.msk.f32.mxu1 %vm934_vm0, %v935_v13  ;;  %vm206_vm2 = vcmask 1043456   ;;  %vm936_vm3 = vmmov 1   ;;  %vm198_vm5 = vcmask 1041409  }
   0x2   :  { %v186_v2 = vld [vmem:[%s1373_s3 + $0x100] sm:$0xff]  ;;  %v796_v4 = vpack.c.bf16 %v171_v1, %v170_v0  ;;  %v187_v5 = vld [vmem:[%s1373_s3 + $0x108] sm:$0xff]  ;;  %v173_v11 = vld [vmem:[%s1373_s3 + $0x98] sm:$0xff] }
   0x3   :  { %v154_v6 = vld [vmem:[%s1373_s3] sm:$0xff]  ;;  %v155_v7 = vld [vmem:[%s1373_s3 + $0x8] sm:$0xff]  ;;  %v829_v8 = vpack.c.bf16 %v187_v5, %v186_v2  ;;  %v188_v12 = vld [vmem:[%s1373_s3 + $0x110] sm:$0xff]  ;;  %v800_v14 = vpack.c.bf16 %v173_v11, %v172_v10 }
   0x4   :  { %v798_v9 = vpack.c.bf16 %v155_v7, %v154_v6  ;;  %797 = vmatprep.subr.bf16.mxu0 %v796_v4  ;;  %v189_v15 = vld [vmem:[%s1373_s3 + $0x118] sm:$0xff]  ;;  %v156_v16 = vld [vmem:[%s1373_s3 + $0x10] sm:$0xff]  ;;  %v174_v20 = vld [vmem:[%s1373_s3 + $0xa0] sm:$0xff] }
   0x5   :  { %v157_v17 = vld [vmem:[%s1373_s3 + $0x18] sm:$0xff]  ;;  %830 = vmatpush3.bf16.msra.mxu1 %v829_v8  ;;  %v832_v18 = vpack.c.bf16 %v189_v15, %v188_v12  ;;  %v175_v21 = vld [vmem:[%s1373_s3 + $0xa8] sm:$0xff]  ;;  %v190_v23 = vld [vmem:[%s1373_s3 + $0x120] sm:$0xff] }
   0x6   :  { %799 = vmatpush3.bf16.msra.mxu0 %v798_v9  ;;  %v802_v19 = vpack.c.bf16 %v157_v17, %v156_v16  ;;  %831 = vmatprep.subr.bf16.mxu1 %v933_v3  ;;  %v804_v22 = vpack.c.bf16 %v175_v21, %v174_v20  ;;  %v191_v24 = vld [vmem:[%s1373_s3 + $0x128] sm:$0xf]  ;;  %v158_v25 = vld [vmem:[%s1373_s3 + $0x20] sm:$0xff]  ;;  %v176_v29 = vld [vmem:[%s1373_s3 + $0xb0] sm:$0xff] }
   0x7   :  { %801 = vmatprep.subr.bf16.mxu0 %v800_v14  ;;  %v159_v26 = vld [vmem:[%s1373_s3 + $0x28] sm:$0xff]  ;;  %v132_v27 = vld [vmem:[%s1372_s2 + $0x80] sm:$0xff]  ;;  %v177_v30 = vld [vmem:[%s1373_s3 + $0xb8] sm:$0xff]  ;;  %v835_v32 = vpack.c.bf16 %v191_v24, %v190_v23 }
   0x8   :  { %v133_v28 = vld [vmem:[%s1372_s2 + $0x88] sm:$0xff]  ;;  %v74_v31 = vld [vmem:[%s1371_s1 + $0x10] sm:$0xff]  ;;  %v806_v33 = vpack.c.bf16 %v159_v26, %v158_v25  ;;  %vm1057_vm4 = vmpackc.low %vm206_vm2, %vm936_vm3  ;;  %v808_v38 = vpack.c.bf16 %v177_v30, %v176_v29 }
   0x9   :  { %833 = vmatpush3.bf16.msra.mxu1 %v832_v18  ;;  %v77_v34 = vld [vmem:[%s1371_s1 + $0x28] sm:$0xff]  ;;  %v90_v35 = vsel %vm45_vm1, %v74_v31, 0.0  ;;  %v838_v37 = vpack.c.bf16 %v133_v28, %v132_v27  ;;  %v160_v41 = vld [vmem:[%s1373_s3 + $0x30] sm:$0xff]  ;;  %v161_v42 = vld [vmem:[%s1373_s3 + $0x38] sm:$0xff] }
   0xa   :  { %803 = vmatpush3.bf16.msra.mxu0 %v802_v19  ;;  %834 = vmatprep.subr.bf16.mxu1 %v933_v3  ;;  %v91_v39 = vrot.slane %v90_v35, 4  ;;  %v109_v40 = vsel %vm45_vm1, %v77_v34, 0.0  ;;  %v178_v44 = vld [vmem:[%s1373_s3 + $0xc0] sm:$0xff]  ;;  %v179_v45 = vld [vmem:[%s1373_s3 + $0xc8] sm:$0xff]  ;;  %v810_v48 = vpack.c.bf16 %v161_v42, %v160_v41  ;;  %v180_v54 = vld [vmem:[%s1373_s3 + $0xd0] sm:$0xff] }
   0xb   :  { %805 = vmatprep.subr.bf16.mxu0 %v804_v22  ;;  %v110_v43 = vrot.slane %v109_v40, 4  ;;  %v812_v50 = vpack.c.bf16 %v179_v45, %v178_v44  ;;  %v162_v51 = vld [vmem:[%s1373_s3 + $0x40] sm:$0xff]  ;;  %v163_v52 = vld [vmem:[%s1373_s3 + $0x48] sm:$0xff]  ;;  %v181_v55 = vld [vmem:[%s1373_s3 + $0xd8] sm:$0xff] }
   0xc   :  { %v92_v46 = vadd.f32 %v91_v39, %v90_v35  ;;  %v116_v57 = vld [vmem:[%s1372_s2] sm:$0xff]  ;;  %v117_v59 = vld [vmem:[%s1372_s2 + $0x8] sm:$0xff]  ;;  %v134_v60 = vld [vmem:[%s1372_s2 + $0x90] sm:$0xff]  ;;  %v814_v62 = vpack.c.bf16 %v163_v52, %v162_v51  ;;  %v816_v1 = vpack.c.bf16 %v181_v55, %v180_v54 }
   0xd   :  { %837 = vmatpush3.bf16.msk.msra.mxu1 %vm1057_vm4, %v835_v32  ;;  %v111_v47 = vadd.f32 %v110_v43, %v109_v40  ;;  %v135_v61 = vld [vmem:[%s1372_s2 + $0x98] sm:$0xff]  ;;  %v1103_v0 = vld [vmem:[%s1372_s2 + $0x10] sm:$0xff]  ;;  %v182_v7 = vld [vmem:[%s1373_s3 + $0xe0] sm:$0xff]  ;;  %v840_v15 = vpack.c.bf16 %v117_v59, %v116_v57 }
   0xe   :  { %807 = vmatpush3.bf16.msra.mxu0 %v806_v33  ;;  %839 = vmatprep.subr.bf16.mxu1 %v838_v37  ;;  %v93_v49 = vrot.slane %v92_v46, 2  ;;  %v164_v2 = vld [vmem:[%s1373_s3 + $0x50] sm:$0xff]  ;;  %v165_v4 = vld [vmem:[%s1373_s3 + $0x58] sm:$0xff]  ;;  %v183_v8 = vld [vmem:[%s1373_s3 + $0xe8] sm:$0xff]  ;;  %v842_v20 = vpack.c.bf16 %v135_v61, %v134_v60 }
   0xf   :  { %809 = vmatprep.subr.bf16.mxu0 %v808_v38  ;;  %v112_v53 = vrot.slane %v111_v47, 2  ;;  %v1114_v6 = vld [vmem:[%s1372_s2 + $0x18] sm:$0xff]  ;;  %v1125_v10 = vld [vmem:[%s1372_s2 + $0xa0] sm:$0xff]  ;;  %v1130_v11 = vld [vmem:[%s1372_s2 + $0xa8] sm:$0xff]  ;;  %v818_v17 = vpack.c.bf16 %v165_v4, %v164_v2  ;;  %v820_v22 = vpack.c.bf16 %v183_v8, %v182_v7 }
  0x10   :  { %v94_v56 = vadd.f32 %v93_v49, %v92_v46  ;;  %v1135_v12 = vld [vmem:[%s1372_s2 + $0x20] sm:$0xff]  ;;  %v1140_v16 = vld [vmem:[%s1372_s2 + $0x28] sm:$0xff]  ;;  %v1151_v21 = vld [vmem:[%s1372_s2 + $0xb0] sm:$0xff]  ;;  %v844_v29 = vpack.c.bf16 %v1114_v6, %v1103_v0  ;;  %v846_v34 = vpack.c.bf16 %v1130_v11, %v1125_v10 }
  0x11   :  { %v113_v58 = vadd.f32 %v112_v53, %v111_v47  ;;  %v73_v18 = vld [vmem:[%s1371_s1 + $0x8] sm:$0xff]  ;;  %v76_v19 = vld [vmem:[%s1371_s1 + $0x20] sm:$0xff]  ;;  %v184_v30 = vld [vmem:[%s1373_s3 + $0xf0] sm:$0xff]  ;;  %v848_v42 = vpack.c.bf16 %v1140_v16, %v1135_v12 }
  0x12   :  { %811 = vmatpush3.bf16.msra.mxu0 %v810_v48  ;;  %v95_v63 = vrot.slane %v94_v56, 1  ;;  %v166_v23 = vld [vmem:[%s1373_s3 + $0x60] sm:$0xff]  ;;  %v167_v24 = vld [vmem:[%s1373_s3 + $0x68] sm:$0xff]  ;;  %v84_v25 = vrot.slane %v73_v18, 4  ;;  %v103_v26 = vrot.slane %v76_v19, 4  ;;  %v185_v31 = vld [vmem:[%s1373_s3 + $0xf8] sm:$0xff] }
  0x13   :  { %813 = vmatprep.subr.bf16.mxu0 %v812_v50  ;;  %v114_v5 = vrot.slane %v113_v58, 1  ;;  %v72_v27 = vld [vmem:[%s1371_s1] sm:$0xff]  ;;  %v75_v32 = vld [vmem:[%s1371_s1 + $0x18] sm:$0xff]  ;;  %v168_v37 = vld [vmem:[%s1373_s3 + $0x70] sm:$0xff]  ;;  %v822_v43 = vpack.c.bf16 %v167_v24, %v166_v23  ;;  %v824_v45 = vpack.c.bf16 %v185_v31, %v184_v30 }
  0x14   :  { %v96_v9 = vadd.f32 %v95_v63, %v94_v56  ;;  %v78_v33 = vrot.slane %v72_v27, 4  ;;  %v139_v35 = vld [vmem:[%s1372_s2 + $0xb8] sm:$0xff]  ;;  %v85_v39 = vadd.f32 %v84_v25, %v73_v18  ;;  %v104_v40 = vadd.f32 %v103_v26, %v76_v19  ;;  %v28_v49 = vld [vmem:[%s1370_s0 + $0x8] sm:$0xff]  ;;  %v31_v53 = vld [vmem:[%s1370_s0 + $0x20] sm:$0xff] }
  0x15   :  { %v115_v14 = vadd.f32 %v114_v5, %v113_v58  ;;  %v169_v38 = vld [vmem:[%s1373_s3 + $0x78] sm:$0xff]  ;;  %v97_v41 = vrot.slane %v75_v32, 4  ;;  %v850_v50 = vpack.c.bf16 %v139_v35, %v1151_v21  ;;  %v39_v54 = vrot.slane %v28_v49, 4  ;;  %v27_v55 = vld [vmem:[%s1370_s0] sm:$0xff]  ;;  %v122_v57 = vld [vmem:[%s1372_s2 + $0x30] sm:$0xff] }
  0x16   :  { %815 = vmatpush3.bf16.msra.mxu0 %v814_v62  ;;  %v79_v44 = vadd.f32 %v78_v33, %v72_v27  ;;  %v86_v46 = vrot.slane %v85_v39, 2  ;;  %v105_v47 = vrot.slane %v104_v40, 2  ;;  %v826_v51 = vpack.c.bf16 %v169_v38, %v168_v37  ;;  %v30_v56 = vld [vmem:[%s1370_s0 + $0x18] sm:$0xff] }
  0x17   :  { %817 = vmatprep.subr.bf16.mxu0 %v816_v1  ;;  %v201_v28 = vsel %vm198_vm5, %v115_v14, %v96_v9  ;;  %v98_v48 = vadd.f32 %v97_v41, %v75_v32  ;;  %v123_v58 = vld [vmem:[%s1372_s2 + $0x38] sm:$0xff]  ;;  %v59_v62 = vrot.slane %v31_v53, 4  ;;  %v40_v0 = vadd.f32 %v39_v54, %v28_v49 }
  0x18   :  { %744 = vmatmul.mubr.msk.f32.vlgmr.msra.gmra.mrb[0].mxu1 %vm45_vm1, %v201_v28  ;;  %v80_v52 = vrot.slane %v79_v44, 2  ;;  %v87_v59 = vadd.f32 %v86_v46, %v85_v39  ;;  %v106_v60 = vadd.f32 %v105_v47, %v104_v40  ;;  %v33_v1 = vrot.slane %v27_v55, 4 }
  0x19   :  { %841 = vmatpush3.bf16.msra.mxu1 %v840_v15  ;;  %v99_v61 = vrot.slane %v98_v48, 2  ;;  %v53_v2 = vrot.slane %v30_v56, 4  ;;  %v60_v7 = vadd.f32 %v59_v62, %v31_v53 }
  0x1a   :  { %819 = vmatpush3.bf16.msra.mxu0 %v818_v17  ;;  %843 = vmatprep.subr.bf16.mxu1 %v842_v20  ;;  %v81_v63 = vadd.f32 %v80_v52, %v79_v44  ;;  %v88_v4 = vrot.slane %v87_v59, 1  ;;  %v107_v5 = vrot.slane %v106_v60, 1 }
  0x1b   :  { %821 = vmatprep.subr.bf16.mxu0 %v820_v22  ;;  %v100_v6 = vadd.f32 %v99_v61, %v98_v48 }
  0x1d   :  { %845 = vmatpush3.bf16.msra.mxu1 %v844_v29 }
  0x1e   :  { %823 = vmatpush3.bf16.msra.mxu0 %v822_v43  ;;  %847 = vmatprep.subr.bf16.mxu1 %v846_v34 }
  0x1f   :  { %825 = vmatprep.subr.bf16.mxu0 %v824_v45 }
  0x20   :  { %12 = vsyncpa [#allocation3], 0  ;;  %v852_v8 = vpack.c.bf16 %v123_v58, %v122_v57  ;;  %v140_v9 = vld [vmem:[%s1372_s2 + $0xc0] sm:$0xff]  ;;  %v141_v10 = vld [vmem:[%s1372_s2 + $0xc8] sm:$0xff]  ;;  %v82_v11 = vrot.slane %v81_v63, 1  ;;  %v41_v12 = vrot.slane %v40_v0, 2  ;;  %v34_v14 = vadd.f32 %v33_v1, %v27_v55 }
  0x21   :  { %v89_v15 = vadd.f32 %v88_v4, %v87_v59  ;;  %v108_v16 = vadd.f32 %v107_v5, %v106_v60  ;;  %v101_v17 = vrot.slane %v100_v6, 1  ;;  %v61_v18 = vrot.slane %v60_v7, 2  ;;  %849 = vmatpush3.bf16.msra.mxu1 %v848_v42  ;;  %v124_v23 = vld [vmem:[%s1372_s2 + $0x40] sm:$0xff]  ;;  %v125_v24 = vld [vmem:[%s1372_s2 + $0x48] sm:$0xff]  ;;  %v142_v26 = vld [vmem:[%s1372_s2 + $0xd0] sm:$0xff]  ;;  %s937_s15 = smov [#allocation2]  }
  0x22   :  { %827 = vmatpush3.bf16.msra.mxu0 %v826_v51  ;;  %v83_v19 = vadd.f32 %v82_v11, %v81_v63  ;;  %v42_v20 = vadd.f32 %v41_v12, %v40_v0  ;;  %v54_v21 = vadd.f32 %v53_v2, %v30_v56  ;;  %851 = vmatprep.subr.bf16.mxu1 %v850_v50  ;;  %v143_v29 = vld [vmem:[%s1372_s2 + $0xd8] sm:$0xff]  ;;  %v29_v31 = vld [vmem:[%s1370_s0 + $0x10] sm:$0xff]  ;;  %v32_v32 = vld [vmem:[%s1370_s0 + $0x28] sm:$0xff]  ;;  %v35_v40 = vrot.slane %v34_v14, 2  ;;  %s616_s16 = sshll.u32 %s937_s15, 4  ;;  %s617_s16 = int_to_ptr.vmem [resolvable:$true] %s616_s16 }
  0x23   :  { %v854_v22 = vpack.c.bf16 %v141_v10, %v140_v9  ;;  %v200_v25 = vsel %vm198_vm5, %v108_v16, %v89_v15  ;;  %v102_v27 = vadd.f32 %v101_v17, %v100_v6  ;;  %v62_v28 = vadd.f32 %v61_v18, %v60_v7  ;;  %880 = vmatprep.subr.bf16.mxu0 %v933_v3  ;;  %v126_v37 = vld [vmem:[%s1372_s2 + $0x50] sm:$0xff]  ;;  %v127_v38 = vld [vmem:[%s1372_s2 + $0x58] sm:$0xff]  ;;  %v144_v46 = vld [vmem:[%s1372_s2 + $0xe0] sm:$0xff]  ;;  %s909_s17 = scalar_lea.vmem %s617_s16, 32  ;;  %p914_p1 = scmp.lt.s32.totalorder %s617_s16, %s617_s16 }
  0x24   :  { %274 = vmatprep.mubr.f32.mxu0 %v200_v25  ;;  %v43_v30 = vrot.slane %v42_v20, 1  ;;  %v856_v35 = vpack.c.bf16 %v125_v24, %v124_v23  ;;  %v55_v41 = vrot.slane %v54_v21, 2  ;;  %v858_v42 = vpack.c.bf16 %v143_v29, %v142_v26  ;;  %v145_v47 = vld [vmem:[%s1372_s2 + $0xe8] sm:$0xff]  ;;  %v128_v50 = vld [vmem:[%s1372_s2 + $0x60] sm:$0xff]  ;;  %v146_v57 = vld [vmem:[%s1372_s2 + $0xf0] sm:$0xff]  ;;  %p910_p0 = scmp.ne.s32.totalorder %s617_s16, %s909_s17  ;;  %p915_p2 = scmp.lt.s32.totalorder %s909_s17, %s909_s17 }
  0x25   :  { %v199_v33 = vsel %vm198_vm5, %v102_v27, %v83_v19  ;;  %v63_v34 = vrot.slane %v62_v28, 1  ;;  %853 = vmatpush3.bf16.msra.mxu1 %v852_v8  ;;  %v46_v44 = vsel %vm45_vm1, %v29_v31, 0.0  ;;  %v65_v45 = vsel %vm45_vm1, %v32_v32, 0.0  ;;  %v129_v51 = vld [vmem:[%s1372_s2 + $0x68] sm:$0xff]  ;;  %v147_v58 = vld [vmem:[%s1372_s2 + $0xf8] sm:$0xff]  ;;  %v130_v60 = vld [vmem:[%s1372_s2 + $0x70] sm:$0xff] }
  0x26   :  { %275 = vmatmul.mubr.f32.vlgmr.msra.gmra.mrb[0].mxu0 %v199_v33  ;;  %v44_v39 = vadd.f32 %v43_v30, %v42_v20  ;;  %855 = vmatprep.subr.bf16.mxu1 %v854_v22  ;;  %v860_v48 = vpack.c.bf16 %v127_v38, %v126_v37  ;;  %v36_v52 = vadd.f32 %v35_v40, %v34_v14  ;;  %v47_v54 = vrot.slane %v46_v44, 4  ;;  %v131_v61 = vld [vmem:[%s1372_s2 + $0x78] sm:$0xff]  ;;  %v148_v9 = vld [vmem:[%s1372_s2 + $0x100] sm:$0xff]  ;;  %v149_v10 = vld [vmem:[%s1372_s2 + $0x108] sm:$0xff]  ;;  %p916_p3 = por %p915_p2, %p914_p1 }
  0x27   :  { %v64_v43 = vadd.f32 %v63_v34, %v62_v28  ;;  %793 = vmatprep.mubr.msk.f32.mxu0 %vm934_vm0, %v935_v13  ;;  %v56_v53 = vadd.f32 %v55_v41, %v54_v21  ;;  %v66_v55 = vrot.slane %v65_v45, 4  ;;  %v862_v56 = vpack.c.bf16 %v145_v47, %v144_v46  ;;  %v150_v16 = vld [vmem:[%s1372_s2 + $0x110] sm:$0xff]  ;;  %v151_v17 = vld [vmem:[%s1372_s2 + $0x118] sm:$0xff]  ;;  %v152_v21 = vld [vmem:[%s1372_s2 + $0x120] sm:$0xff] }
  0x28   :  { %v864_v59 = vpack.c.bf16 %v129_v51, %v128_v50  ;;  %v37_v62 = vrot.slane %v36_v52, 1  ;;  %v48_v0 = vadd.f32 %v47_v54, %v46_v44  ;;  %v866_v2 = vpack.c.bf16 %v147_v58, %v146_v57  ;;  %v153_v22 = vld [vmem:[%s1372_s2 + $0x128] sm:$0xf]  ;;  %v515_v26 = vld [vmem:[%s1375_s5] sm:$0xff]  ;;  %v517_v36 = vld [vmem:[%s1375_s5 + $0x10] sm:$0xff]  ;;  %p917_p4 = pnand %p916_p3, %p910_p0 }
  0x29   :  { %v357_v49 = vsel %vm198_vm5, %v64_v43, %v44_v39  ;;  %857 = vmatpush3.bf16.msra.mxu1 %v856_v35  ;;  %v57_v63 = vrot.slane %v56_v53, 1  ;;  %v67_v1 = vadd.f32 %v66_v55, %v65_v45  ;;  %v868_v4 = vpack.c.bf16 %v131_v61, %v130_v60  ;;  %v516_v27 = vld [vmem:[%s1375_s5 + $0x8] sm:$0xff]  ;;  %v518_v29 = vld [vmem:[%s1375_s5 + $0x18] sm:$0xff]  ;;  %v519_v30 = vld [vmem:[%s1375_s5 + $0x20] sm:$0xff] }
  0x2a   :  { %430 = vmatprep.mubr.f32.mxu1 %v357_v49  ;;  %859 = vmatprep.subr.bf16.mxu1 %v858_v42  ;;  %v38_v5 = vadd.f32 %v37_v62, %v36_v52  ;;  %v49_v7 = vrot.slane %v48_v0, 2  ;;  %v871_v12 = vpack.c.bf16 %v149_v10, %v148_v9  ;;  %v874_v18 = vpack.c.bf16 %v151_v17, %v150_v16  ;;  %v520_v32 = vld [vmem:[%s1375_s5 + $0x28] sm:$0xff]  ;;  %v521_v34 = vld [vmem:[%s1375_s5 + $0x30] sm:$0xff]  ;;  %v522_v35 = vld [vmem:[%s1375_s5 + $0x38] sm:$0xff] }
  0x2b   :  { %v58_v6 = vadd.f32 %v57_v63, %v56_v53  ;;  %v68_v8 = vrot.slane %v67_v1, 2  ;;  %v877_v23 = vpack.c.bf16 %v153_v22, %v152_v21  ;;  %v881_v28 = vpack.c.bf16 %v516_v27, %v515_v26  ;;  %v523_v38 = vld [vmem:[%s1375_s5 + $0x40] sm:$0xff]  ;;  %v524_v39 = vld [vmem:[%s1375_s5 + $0x48] sm:$0xff]  ;;  %v525_v41 = vld [vmem:[%s1375_s5 + $0x50] sm:$0xff] }
  0x2c   :  { %v50_v14 = vadd.f32 %v49_v7, %v48_v0  ;;  %v884_v31 = vpack.c.bf16 %v518_v29, %v517_v36  ;;  %v887_v33 = vpack.c.bf16 %v520_v32, %v519_v30  ;;  %v890_v37 = vpack.c.bf16 %v522_v35, %v521_v34  ;;  %v526_v42 = vld [vmem:[%s1375_s5 + $0x58] sm:$0xff]  ;;  %v527_v44 = vld [vmem:[%s1375_s5 + $0x60] sm:$0xff]  ;;  %v528_v45 = vld [vmem:[%s1375_s5 + $0x68] sm:$0xff] }
  0x2d   :  { %861 = vmatpush3.bf16.msra.mxu1 %v860_v48  ;;  %v356_v11 = vsel %vm198_vm5, %v58_v6, %v38_v5  ;;  %v69_v15 = vadd.f32 %v68_v8, %v67_v1  ;;  %882 = vmatpush3.bf16.msra.mxu0 %v881_v28  ;;  %v893_v40 = vpack.c.bf16 %v524_v39, %v523_v38  ;;  %v529_v47 = vld [vmem:[%s1375_s5 + $0x70] sm:$0xff]  ;;  %v530_v48 = vld [vmem:[%s1375_s5 + $0x78] sm:$0xff]  ;;  %v628_v60 = vld [vmem:[%s1374_s4] ss:$0 sm:$0xff]  ;;  %vm608_vm6 = vcmask 9216  }
  0x2e   :  { %863 = vmatprep.subr.bf16.mxu1 %v862_v56  ;;  %v51_v19 = vrot.slane %v50_v14, 1  ;;  %883 = vmatprep.subr.bf16.mxu0 %v933_v3  ;;  %v896_v43 = vpack.c.bf16 %v526_v42, %v525_v41  ;;  %v899_v46 = vpack.c.bf16 %v528_v45, %v527_v44  ;;  %v902_v49 = vpack.c.bf16 %v530_v48, %v529_v47  ;;  %v629_v1 = vld [vmem:[%s1376_s6] ss:$0 sm:$0xff] }
  0x2f   :  { %v70_v20 = vrot.slane %v69_v15, 1 }
  0x30   :  { %v52_v24 = vadd.f32 %v51_v19, %v50_v14 }
  0x31   :  { %865 = vmatpush3.bf16.msra.mxu1 %v864_v59  ;;  %v71_v25 = vadd.f32 %v70_v20, %v69_v15  ;;  %885 = vmatpush3.bf16.msra.mxu0 %v884_v31 }
  0x32   :  { %867 = vmatprep.subr.bf16.mxu1 %v866_v2  ;;  %886 = vmatprep.subr.bf16.mxu0 %v933_v3 }
  0x35   :  { %869 = vmatpush3.bf16.msra.mxu1 %v868_v4  ;;  %888 = vmatpush3.bf16.msra.mxu0 %v887_v33 }
  0x36   :  { %870 = vmatprep.subr.bf16.mxu1 %v933_v3  ;;  %889 = vmatprep.subr.bf16.mxu0 %v933_v3 }
  0x38   :  { %431 = vmatmul.mubr.f32.vlgmr.msra.gmra.mrb[2].mxu1 %v356_v11 }
  0x39   :  { %872 = vmatpush3.bf16.msra.mxu1 %v871_v12  ;;  %758 = vmatprep.mubr.msk.f32.mxu1 %vm934_vm0, %v935_v13  ;;  %v358_v13 = vsel %vm198_vm5, %v71_v25, %v52_v24 }
  0x3a   :  { %873 = vmatprep.subr.bf16.mxu1 %v933_v3  ;;  %891 = vmatpush3.bf16.msra.mxu0 %v890_v37 }
  0x3b   :  { %892 = vmatprep.subr.bf16.mxu0 %v933_v3 }
  0x3d   :  { %875 = vmatpush3.bf16.msra.mxu1 %v874_v18 }
  0x3e   :  { %876 = vmatprep.subr.bf16.mxu1 %v933_v3  ;;  %894 = vmatpush3.bf16.msra.mxu0 %v893_v40 }
  0x3f   :  { %895 = vmatprep.subr.bf16.mxu0 %v933_v3 }
  0x41   :  { %879 = vmatpush3.bf16.msk.msra.mxu1 %vm1057_vm4, %v877_v23 }
  0x42   :  { %897 = vmatpush3.bf16.msra.mxu0 %v896_v43 }
  0x43   :  { %898 = vmatprep.subr.bf16.mxu0 %v933_v3 }
  0x44   :  { %759 = vmatmul.mubr.msk.f32.vlgmr.msra.gmra.mrb[4].mxu1 %vm45_vm1, %v358_v13 }
  0x46   :  { %900 = vmatpush3.bf16.msra.mxu0 %v899_v46 }
  0x47   :  { %901 = vmatprep.subr.bf16.mxu0 %v933_v3 }
  0x4a   :  { %903 = vmatpush3.bf16.msra.mxu0 %v902_v49 }
  0xeb   :  { %v346_v50 = vpop.f32.mrb[0].mxu1 }
  0xec   :  { %v745_v51 = vpop.f32.mrb[1].mxu1 }
  0xf9   :  { %v662_v52 = vpop.f32.mrb[0].mxu0 }
  0xfa   :  { %v663_v53 = vpop.f32.mrb[1].mxu0 }
  0xfb   :  { %v664_v54 = vadd.f32 %v663_v53, %v662_v52 }
  0xfd   :  { %v347_v55 = vadd.f32 %v664_v54, %v346_v50 }
 0x10b   :  { %v704_v56 = vpop.f32.mrb[2].mxu1 }
 0x10c   :  { %v705_v57 = vpop.f32.mrb[3].mxu1 }
 0x10d   :  { %v706_v58 = vadd.f32 %v705_v57, %v704_v56 }
 0x10f   :  { %v433_v3 = vadd.f32 %v706_v58, %v347_v55 }
 0x117   :  { %v502_v59 = vpop.f32.mrb[4].mxu1 }
 0x118   :  { %v503_v61 = vadd.f32 %v502_v59, %v433_v3  ;;  %v760_v62 = vpop.f32.mrb[5].mxu1 }
 0x11a   :  { %v513_v63 = vadd.f32 %v628_v60, %v503_v61 }
 0x11c   :  { %v514_v0 = vmax.f32 %v513_v63, 0.0 }
 0x11e   :  { %794 = vmatmul.mubr.f32.vlgmr.msra.gmra.mrb[2].mxu0 %v514_v0 }
 0x1f1   :  { %v604_v2 = vpop.f32.mrb[2].mxu0 }
 0x1f2   :  { %v605_v4 = vadd.f32 %v629_v1, %v604_v2  ;;  %v795_v5 = vpop.f32.mrb[3].mxu0 }
 0x1f4   :  { %609 = vst.msk [vmem:[#allocation2] sm:$0x3] %vm608_vm6, %v605_v4 }
 0x1f5   :  { %920 = shalt.err (!%p917_p4)
}
 0x1f6   :  { %s921_s19 = scalar_lea.hbm %s1377_s7, 32 }
 0x1f7   :  { %p922_p5 = scmp.ne.s32.totalorder %s1377_s7, %s921_s19  ;;  %p925_p6 = scmp.lt.u32.totalorder %s921_s19, %s1377_s7 }
 0x1f9   :  { %p927_p7 = pnand %p925_p6, %p922_p5 }
 0x1fb   :  { %930 = shalt.err (!%p927_p7)
}
 0x1fc   :  { %619 = dma.vmem_to_hbm [thread:$0]  %s617_s16, 32, %s1377_s7, [#allocation3]  }
 0x1fd   :  { %931 = dma.done.wait [#allocation3], 32  }
 0x1fe   :  { %932 = vsyncadd [#allocation3], 4294967264 }
 0x1ff   :  { %623 = vsyncpa [#allocation3], 1 }

</bundles_post_ra>
